<compile_context>
chip_gen: v5e
topology: v5e:2x2
jax: 0.10.0
libtpu: 0.0.40
codegen_flags: <defaults>
</compile_context>

<pallas_src>
import functools

import jax
import jax.numpy as jnp
from jax import lax
from jax.experimental import pallas as pl
from jax.experimental.pallas import tpu as pltpu


def _mlp_kernel(x_ref, w1_ref, b1_ref, w2_ref, b2_ref, o_ref, *,
                num_chunks, chunk):
    b1 = b1_ref[...].astype(jnp.float32)   # (1, f*H)
    b2 = b2_ref[...].astype(jnp.float32)   # (1, f*Dout)

    def body(c, carry):
        r = pl.multiple_of(c * chunk, chunk)
        x_c = x_ref[pl.ds(r, chunk), :]                       # (chunk, f*Din)
        # fc1 (block-diagonal) + bias + ReLU, f32 accumulate / epilogue.
        h = jnp.dot(x_c, w1_ref[...], preferred_element_type=jnp.float32)
        h = jnp.maximum(h + b1, 0.0)
        # fc2 (block-diagonal) + bias.
        out = jnp.dot(h.astype(w2_ref.dtype), w2_ref[...],
                      preferred_element_type=jnp.float32)
        o_ref[pl.ds(r, chunk), :] = (out + b2).astype(o_ref.dtype)
        return carry

    lax.fori_loop(0, num_chunks, body, None, unroll=True)


def _round_up(v, m):
    return ((v + m - 1) // m) * m


def _block_diag(w, f):
    """(Din, Dout) -> block-diagonal (f*Din, f*Dout), built once in HBM."""
    din, dout = w.shape
    eye = jnp.eye(f, dtype=w.dtype)
    return jnp.einsum("ij,kl->ikjl", eye, w).reshape(f * din, f * dout)


def _default_fold():
    # 256-wide MXU parts (v6e / v7x) -> fold 8; 128-wide (<= v5) -> fold 4.
    try:
        kind = jax.devices()[0].device_kind.lower()
    except Exception:
        return 8
    return 4 if any(v in kind for v in ("v2", "v3", "v4", "v5")) else 8


def tuple_embedding_forward(x, w1, b1, w2, b2, *, tile_tokens=1024, fold=None,
                            compute_dtype=None):
    """
    x  : (batch, seq, input_dim)
    w1 : (input_dim, hidden_dim), b1 : (hidden_dim,)
    w2 : (hidden_dim, output_dim), b2 : (output_dim,)
    returns (batch, seq, output_dim)
    """
    B, S, Din = x.shape
    H = w1.shape[1]
    Dout = w2.shape[1]
    M = B * S

    if compute_dtype is not None:
        # bf16 MXU operands (f32 accumulation stays); cast once, not per step.
        x = x.astype(compute_dtype)
        w1, b1 = w1.astype(compute_dtype), b1.astype(compute_dtype)
        w2, b2 = w2.astype(compute_dtype), b2.astype(compute_dtype)

    f = _default_fold() if fold is None else fold
    itemsize = jnp.dtype(x.dtype).itemsize
    sub = {4: 8, 2: 16, 1: 32}.get(itemsize, 8)   # dtype-aware sublane tile

    # Pad tokens so the fold is exact and the folded row count is a sublane
    # multiple (keeps every block within the array bounds).
    M_pad = _round_up(M, f * sub)
    x2d = x.reshape(M, Din)
    if M_pad != M:
        x2d = jnp.pad(x2d, ((0, M_pad - M), (0, 0)))
    Mf = M_pad // f
    x_fold = x2d.reshape(Mf, f * Din)             # free: features fastest axis

    # Block-diagonal weights / tiled biases, built once in the wrapper.
    w1_bd = _block_diag(w1, f)                    # (f*Din, f*H)
    w2_bd = _block_diag(w2, f)                    # (f*H,   f*Dout)
    b1_bd = jnp.tile(b1, f).reshape(1, f * H)
    b2_bd = jnp.tile(b2, f).reshape(1, f * Dout)

    # Row tiling in folded space.  Big tiles amortize grid overhead; the inner
    # chunk (~256 tokens) keeps the ReLU intermediate in vregs.
    desired_tile = _round_up(min(pl.cdiv(tile_tokens, f), Mf), sub)
    chunk = min(max(sub, _round_up(max(1, 256 // f), sub)), desired_tile)
    tile_fold = (desired_tile // chunk) * chunk
    grid_m = pl.cdiv(Mf, tile_fold)

    # Split a 1-step grid across the two v7x TensorCores only if each half
    # gets >= ~256 tokens (no-op overhead avoidance on single-TC v5e/v6e).
    half_min = max(chunk, _round_up(pl.cdiv(256, f), sub))
    if grid_m == 1 and Mf >= 2 * half_min:
        tile_fold = _round_up(pl.cdiv(Mf, 2), chunk)
        grid_m = pl.cdiv(Mf, tile_fold)

    num_chunks = tile_fold // chunk

    w_isz = jnp.dtype(w1.dtype).itemsize
    cost = pl.CostEstimate(
        flops=2 * Mf * (f * Din * f * H + f * H * f * Dout),
        transcendentals=0,
        bytes_accessed=M_pad * (Din + Dout) * itemsize
        + (f * Din * f * H + f * H + f * H * f * Dout + f * Dout) * w_isz,
    )

    kernel = functools.partial(_mlp_kernel, num_chunks=num_chunks, chunk=chunk)

    out_fold = pl.pallas_call(
        kernel,
        out_shape=jax.ShapeDtypeStruct((Mf, f * Dout), x.dtype),
        grid_spec=pltpu.PrefetchScalarGridSpec(
            num_scalar_prefetch=0,
            grid=(grid_m,),
            in_specs=[
                pl.BlockSpec((tile_fold, f * Din), lambda i: (i, 0)),  # x tile
                pl.BlockSpec((f * Din, f * H), lambda i: (0, 0)),      # W1_bd
                pl.BlockSpec((1, f * H), lambda i: (0, 0)),            # b1
                pl.BlockSpec((f * H, f * Dout), lambda i: (0, 0)),     # W2_bd
                pl.BlockSpec((1, f * Dout), lambda i: (0, 0)),         # b2
            ],
            out_specs=pl.BlockSpec((tile_fold, f * Dout), lambda i: (i, 0)),
        ),
        compiler_params=pltpu.CompilerParams(
            dimension_semantics=("parallel",)),
        cost_estimate=cost,
    )(x_fold, w1_bd, b1_bd, w2_bd, b2_bd)

    out = out_fold.reshape(M_pad, Dout)
    if M_pad != M:
        out = out[:M]
    return out.reshape(B, S, Dout)


def _init_params(key, input_dim, hidden_dim, output_dim, dtype=jnp.float32):
    # Deterministic synthetic init (mimicking nn.Linear's uniform fan-in init);
    # weights stored as (in_features, out_features) so the kernel does x @ W.
    k1, k2, k3, k4 = jax.random.split(key, 4)
    lim1 = 1.0 / (input_dim ** 0.5)
    lim2 = 1.0 / (hidden_dim ** 0.5)
    w1 = jax.random.uniform(k1, (input_dim, hidden_dim), dtype, -lim1, lim1)
    b1 = jax.random.uniform(k2, (hidden_dim,), dtype, -lim1, lim1)
    w2 = jax.random.uniform(k3, (hidden_dim, output_dim), dtype, -lim2, lim2)
    b2 = jax.random.uniform(k4, (output_dim,), dtype, -lim2, lim2)
    return w1, b1, w2, b2


def _ref(x, w1, b1, w2, b2):
    return jnp.maximum(x @ w1 + b1, 0.0) @ w2 + b2


if __name__ == "__main__":
    batch, seq, input_dim, hidden_dim, output_dim = 2, 8, 32, 64, 16

    key = jax.random.PRNGKey(0)
    kx, kp, kx2 = jax.random.split(key, 3)
    x = jax.random.normal(kx, (batch, seq, input_dim), jnp.float32)
    w1, b1, w2, b2 = _init_params(kp, input_dim, hidden_dim, output_dim)

    out = jax.block_until_ready(tuple_embedding_forward(x, w1, b1, w2, b2))
    ref = _ref(x, w1, b1, w2, b2)
    assert out.shape == (batch, seq, output_dim)
    assert jnp.allclose(out, ref, atol=1e-5, rtol=1e-5)

    # Second check: token count not a multiple of fold/tile -> exercises the
    # pad + partial-tail-block path.
    x2 = jax.random.normal(kx2, (3, 37, input_dim), jnp.float32)
    out2 = jax.block_until_ready(tuple_embedding_forward(x2, w1, b1, w2, b2))
    ref2 = _ref(x2, w1, b1, w2, b2)
    assert out2.shape == (3, 37, output_dim)
    assert jnp.allclose(out2, ref2, atol=1e-5, rtol=1e-5)

    print("KERNEL_OK")
</pallas_src>

<mosaic_0001>
module attributes {stable_mosaic.version = 11 : i64} {
  func.func @_mlp_kernel(%arg0: i32, %arg1: memref<8x256xf32, #tpu.memory_space<vmem>>, %arg2: memref<256x512xf32, #tpu.memory_space<vmem>>, %arg3: memref<1x512xf32, #tpu.memory_space<vmem>>, %arg4: memref<512x128xf32, #tpu.memory_space<vmem>>, %arg5: memref<1x128xf32, #tpu.memory_space<vmem>>, %arg6: memref<8x128xf32, #tpu.memory_space<vmem>>) attributes {dimension_semantics = [#tpu.dimension_semantics<parallel>], iteration_bounds = array<i64: 1>, scalar_prefetch = 0 : i64, scratch_operands = 0 : i64, tpu.core_type = #tpu.core_type<tc>, window_params = [{transform_indices = @transform_0, window_bounds = array<i64: 8, 256>}, {pipeline_mode = #tpu.pipeline_mode<synchronous>, transform_indices = @transform_1, window_bounds = array<i64: 256, 512>}, {pipeline_mode = #tpu.pipeline_mode<synchronous>, transform_indices = @transform_2, window_bounds = array<i64: 1, 512>}, {pipeline_mode = #tpu.pipeline_mode<synchronous>, transform_indices = @transform_3, window_bounds = array<i64: 512, 128>}, {pipeline_mode = #tpu.pipeline_mode<synchronous>, transform_indices = @transform_4, window_bounds = array<i64: 1, 128>}, {transform_indices = @transform_5, window_bounds = array<i64: 8, 128>}]} {
    %c0 = arith.constant 0 : index
    %c0_0 = arith.constant 0 : index
    %0 = vector.load %arg3[%c0, %c0_0] : memref<1x512xf32, #tpu.memory_space<vmem>>, vector<1x512xf32>
    %c0_1 = arith.constant 0 : index
    %c0_2 = arith.constant 0 : index
    %1 = vector.load %arg5[%c0_1, %c0_2] : memref<1x128xf32, #tpu.memory_space<vmem>>, vector<1x128xf32>
    %c0_i32 = arith.constant 0 : i32
    %c8_i32 = arith.constant 8 : i32
    %2 = arith.muli %c0_i32, %c8_i32 : i32
    %3 = tpu.assume_multiple %2, 8 : i32
    %4 = arith.index_cast %3 : i32 to index
    %c0_3 = arith.constant 0 : index
    %5 = vector.load %arg1[%4, %c0_3] : memref<8x256xf32, #tpu.memory_space<vmem>>, vector<8x256xf32>
    %c0_4 = arith.constant 0 : index
    %c0_5 = arith.constant 0 : index
    %6 = vector.load %arg2[%c0_4, %c0_5] : memref<256x512xf32, #tpu.memory_space<vmem>>, vector<256x512xf32>
    %cst = arith.constant dense<0.000000e+00> : vector<8x512xf32>
    %7 = tpu.matmul %5, %6, %cst {dimension_numbers = #tpu.dot_dimension_numbers<[1], [0], [0], [1], [0, 0, 1, 1], [], []>} : vector<8x256xf32>, vector<256x512xf32>, vector<8x512xf32> -> vector<8x512xf32>
    %8 = vector.broadcast %0 : vector<1x512xf32> to vector<8x512xf32>
    %9 = arith.addf %7, %8 : vector<8x512xf32>
    %cst_6 = arith.constant 0.000000e+00 : f32
    %10 = vector.broadcast %cst_6 : f32 to vector<8x512xf32>
    %11 = arith.maximumf %9, %10 : vector<8x512xf32>
    %c0_7 = arith.constant 0 : index
    %c0_8 = arith.constant 0 : index
    %12 = vector.load %arg4[%c0_7, %c0_8] : memref<512x128xf32, #tpu.memory_space<vmem>>, vector<512x128xf32>
    %cst_9 = arith.constant dense<0.000000e+00> : vector<8x128xf32>
    %13 = tpu.matmul %11, %12, %cst_9 {dimension_numbers = #tpu.dot_dimension_numbers<[1], [0], [0], [1], [0, 0, 1, 1], [], []>} : vector<8x512xf32>, vector<512x128xf32>, vector<8x128xf32> -> vector<8x128xf32>
    %14 = vector.broadcast %1 : vector<1x128xf32> to vector<8x128xf32>
    %15 = arith.addf %13, %14 : vector<8x128xf32>
    %16 = arith.index_cast %3 : i32 to index
    %c0_10 = arith.constant 0 : index
    %17 = vector.load %arg6[%16, %c0_10] : memref<8x128xf32, #tpu.memory_space<vmem>>, vector<8x128xf32>
    tpu.vector_store %arg6[%16, %c0_10], %15 {strides = array<i32>} : memref<8x128xf32, #tpu.memory_space<vmem>>, vector<8x128xf32>,
    %c1_i32 = arith.constant 1 : i32
    return
  }
  func.func @transform_0(%arg0: i32) -> (i32, i32) {
    %c0_i32 = arith.constant 0 : i32
    %c0_i32_0 = arith.constant 0 : i32
    return %arg0, %c0_i32 : i32, i32
  }
  func.func @transform_1(%arg0: i32) -> (i32, i32) {
    %c0_i32 = arith.constant 0 : i32
    %c0_i32_0 = arith.constant 0 : i32
    %c0_i32_1 = arith.constant 0 : i32
    return %c0_i32, %c0_i32_0 : i32, i32
  }
  func.func @transform_2(%arg0: i32) -> (i32, i32) {
    %c0_i32 = arith.constant 0 : i32
    %c0_i32_0 = arith.constant 0 : i32
    %c0_i32_1 = arith.constant 0 : i32
    return %c0_i32, %c0_i32_0 : i32, i32
  }
  func.func @transform_3(%arg0: i32) -> (i32, i32) {
    %c0_i32 = arith.constant 0 : i32
    %c0_i32_0 = arith.constant 0 : i32
    %c0_i32_1 = arith.constant 0 : i32
    return %c0_i32, %c0_i32_0 : i32, i32
  }
  func.func @transform_4(%arg0: i32) -> (i32, i32) {
    %c0_i32 = arith.constant 0 : i32
    %c0_i32_0 = arith.constant 0 : i32
    %c0_i32_1 = arith.constant 0 : i32
    return %c0_i32, %c0_i32_0 : i32, i32
  }
  func.func @transform_5(%arg0: i32) -> (i32, i32) {
    %c0_i32 = arith.constant 0 : i32
    %c0_i32_0 = arith.constant 0 : i32
    return %arg0, %c0_i32 : i32, i32
  }
}

</mosaic_0001>

<bundles_post_ra>
// kernel: tpu_custom_call.1
= control target key start
LH: loop header
LB: loop body
LE: loop exit
PB: predicated region body
PF: predicated region fallthrough
CT: control target
= control target key end

     0   :  { %10 = vsyncpa [#allocation3], 0  ;;  %s750_s0 = inlined_call_operand.hbm [shape: f32[8,256], index: 0, kind: input, shape index: {}]   ;;  %s751_s1 = inlined_call_operand.hbm [shape: f32[256,512], index: 1, kind: input, shape index: {}]   ;;  %s752_s2 = inlined_call_operand.hbm [shape: f32[1,512], index: 2, kind: input, shape index: {}]   ;;  %s753_s3 = inlined_call_operand.hbm [shape: f32[512,128], index: 3, kind: input, shape index: {}]   ;;  %s754_s4 = inlined_call_operand.vmem [shape: f32[1,128], index: 4, kind: input, shape index: {}]   ;;  %s755_s5 = inlined_call_operand.hbm [shape: f32[8,128], index: 5, kind: output, shape index: {}]  }
   0x1   :  { %11 = vsyncpa [#allocation6], 0 }
   0x2   :  { %12 = vsyncpa [#allocation9], 0  ;;  %s29_s20 = sshll.u32 %s751_s1, 4  ;;  %s30_s20 = int_to_ptr.hbm [resolvable:$true] %s29_s20 }
   0x3   :  { %13 = vsyncpa [#allocation4], 0  ;;  %s693_s21 = smov [#allocation5]   ;;  %s19_s25 = sshll.u32 %s750_s0, 4  ;;  %s20_s25 = int_to_ptr.hbm [resolvable:$true] %s19_s25 }
   0x4   :  { %s31_s22 = sshll.u32 %s693_s21, 4  ;;  %s694_s26 = smov 512   ;;  %s32_s22 = int_to_ptr.vmem [resolvable:$true] %s31_s22 }
   0x5   :  { %s695_s27 = smov 32   ;;  %s696_s28 = smov [#allocation2]  }
   0x6   :  { %37 = dma.hbm_to_vmem [thread:$0]  %s30_s20, 16384, %s32_s22, [#allocation6], %s694_s26, %s694_s26, %s695_s27  }
   0x7   :  { %s21_s29 = sshll.u32 %s696_s28, 4  ;;  %s43_s7 = sshll.u32 %s752_s2, 4  ;;  %s22_s29 = int_to_ptr.vmem [resolvable:$true] %s21_s29  ;;  %s44_s7 = int_to_ptr.hbm [resolvable:$true] %s43_s7 }
   0x8   :  { %24 = dma.hbm_to_vmem [thread:$0]  %s20_s25, 256, %s22_s29, [#allocation3]  }
   0x9   :  { %s53_s9 = sshll.u32 %s753_s3, 4  ;;  %s697_s10 = smov [#allocation7]   ;;  %s54_s9 = int_to_ptr.hbm [resolvable:$true] %s53_s9 }
   0xa   :  { %s45_s11 = sshll.u32 %s697_s10, 4  ;;  %s698_s0 = smov [#allocation8]   ;;  %s46_s11 = int_to_ptr.vmem [resolvable:$true] %s45_s11 }
   0xb   :  { %48 = dma.hbm_to_vmem [thread:$0]  %s44_s7, 64, %s46_s11, [#allocation6]  }
   0xc   :  { %s55_s12 = sshll.u32 %s698_s0, 4  ;;  %s699_s13 = smov 128   ;;  %s56_s12 = int_to_ptr.vmem [resolvable:$true] %s55_s12 }
   0xd   :  { %s700_s14 = smov 8  }
   0xe   :  { %61 = dma.hbm_to_vmem [thread:$0]  %s54_s9, 8192, %s56_s12, [#allocation9], %s699_s13, %s699_s13, %s700_s14  }
   0xf   :  { %685 = dma.done.wait [#allocation3], 256  }
  0x10   :  { %686 = vsyncadd [#allocation3], 4294967040 }
  0x11   :  { %687 = dma.done.wait [#allocation6], 16448  }
  0x12   :  { %688 = vsyncadd [#allocation6], 4294950848 }
  0x13   :  { %689 = dma.done.wait [#allocation9], 8192  }
  0x14   :  { %690 = vsyncadd [#allocation9], 4294959104  ;;  %v147_v0 = vld [vmem:[#allocation5 + $0x1e0] sm:$0xff]  ;;  %v148_v1 = vld [vmem:[#allocation5 + $0x1e8] sm:$0xff]  ;;  %s701_s15 = smov [#allocation10]   ;;  %s543_s19 = sshll.u32 %s755_s5, 4  ;;  %s544_s19 = int_to_ptr.hbm [resolvable:$true] %s543_s19 }
  0x15   :  { %v143_v2 = vld [vmem:[#allocation5 + $0x1c0] sm:$0xff]  ;;  %224 = vmatpush.msra.mxu0 %v147_v0  ;;  %264 = vmatpush.msra.mxu2 %v148_v1  ;;  %v144_v4 = vld [vmem:[#allocation5 + $0x1c8] sm:$0xff]  ;;  %v149_v62 = vld [vmem:[#allocation5 + $0x1f0] sm:$0xff]  ;;  %s541_s16 = sshll.u32 %s701_s15, 4  ;;  %s542_s16 = int_to_ptr.vmem [resolvable:$true] %s541_s16 }
  0x16   :  { %v211_v3 = vld [vmem:[#allocation5 + $0x3e0] sm:$0xff]  ;;  %v212_v5 = vld [vmem:[#allocation5 + $0x3e8] sm:$0xff]  ;;  %v150_v63 = vld [vmem:[#allocation5 + $0x1f8] sm:$0xff] }
  0x17   :  { %244 = vmatpush.msra.mxu1 %v211_v3  ;;  %284 = vmatpush.msra.mxu3 %v212_v5  ;;  %v139_v6 = vld [vmem:[#allocation5 + $0x1a0] sm:$0xff]  ;;  %v140_v8 = vld [vmem:[#allocation5 + $0x1a8] sm:$0xff]  ;;  %v213_v3 = vld [vmem:[#allocation5 + $0x3f0] sm:$0xff] }
  0x18   :  { %v207_v7 = vld [vmem:[#allocation5 + $0x3c0] sm:$0xff]  ;;  %225 = vmatpush.msra.mxu0 %v143_v2  ;;  %265 = vmatpush.msra.mxu2 %v144_v4  ;;  %v208_v9 = vld [vmem:[#allocation5 + $0x3c8] sm:$0xff]  ;;  %v145_v2 = vld [vmem:[#allocation5 + $0x1d0] sm:$0xff] }
  0x19   :  { %v203_v10 = vld [vmem:[#allocation5 + $0x3a0] sm:$0xff]  ;;  %245 = vmatpush.msra.mxu1 %v207_v7  ;;  %285 = vmatpush.msra.mxu3 %v208_v9  ;;  %v136_v12 = vld [vmem:[#allocation5 + $0x188] sm:$0xff]  ;;  %v146_v4 = vld [vmem:[#allocation5 + $0x1d8] sm:$0xff] }
  0x1a   :  { %v135_v11 = vld [vmem:[#allocation5 + $0x180] sm:$0xff]  ;;  %v204_v13 = vld [vmem:[#allocation5 + $0x3a8] sm:$0xff]  ;;  %226 = vmatpush.msra.mxu0 %v139_v6  ;;  %266 = vmatpush.msra.mxu2 %v140_v8  ;;  %v214_v5 = vld [vmem:[#allocation5 + $0x3f8] sm:$0xff] }
  0x1b   :  { %v199_v14 = vld [vmem:[#allocation5 + $0x380] sm:$0xff]  ;;  %v200_v15 = vld [vmem:[#allocation5 + $0x388] sm:$0xff]  ;;  %246 = vmatpush.msra.mxu1 %v203_v10  ;;  %286 = vmatpush.msra.mxu3 %v204_v13  ;;  %v141_v6 = vld [vmem:[#allocation5 + $0x1b0] sm:$0xff] }
  0x1c   :  { %v131_v16 = vld [vmem:[#allocation5 + $0x160] sm:$0xff]  ;;  %v132_v17 = vld [vmem:[#allocation5 + $0x168] sm:$0xff]  ;;  %227 = vmatpush.msra.mxu0 %v135_v11  ;;  %267 = vmatpush.msra.mxu2 %v136_v12  ;;  %v209_v7 = vld [vmem:[#allocation5 + $0x3d0] sm:$0xff] }
  0x1d   :  { %v195_v18 = vld [vmem:[#allocation5 + $0x360] sm:$0xff]  ;;  %v196_v19 = vld [vmem:[#allocation5 + $0x368] sm:$0xff]  ;;  %247 = vmatpush.msra.mxu1 %v199_v14  ;;  %287 = vmatpush.msra.mxu3 %v200_v15  ;;  %v142_v8 = vld [vmem:[#allocation5 + $0x1b8] sm:$0xff] }
  0x1e   :  { %v127_v20 = vld [vmem:[#allocation5 + $0x140] sm:$0xff]  ;;  %v128_v21 = vld [vmem:[#allocation5 + $0x148] sm:$0xff]  ;;  %228 = vmatpush.msra.mxu0 %v131_v16  ;;  %268 = vmatpush.msra.mxu2 %v132_v17  ;;  %v210_v9 = vld [vmem:[#allocation5 + $0x3d8] sm:$0xff] }
  0x1f   :  { %v191_v22 = vld [vmem:[#allocation5 + $0x340] sm:$0xff]  ;;  %v192_v23 = vld [vmem:[#allocation5 + $0x348] sm:$0xff]  ;;  %248 = vmatpush.msra.mxu1 %v195_v18  ;;  %288 = vmatpush.msra.mxu3 %v196_v19  ;;  %v137_v10 = vld [vmem:[#allocation5 + $0x190] sm:$0xff] }
  0x20   :  { %v123_v24 = vld [vmem:[#allocation5 + $0x120] sm:$0xff]  ;;  %v124_v25 = vld [vmem:[#allocation5 + $0x128] sm:$0xff]  ;;  %229 = vmatpush.msra.mxu0 %v127_v20  ;;  %269 = vmatpush.msra.mxu2 %v128_v21  ;;  %v205_v11 = vld [vmem:[#allocation5 + $0x3b0] sm:$0xff] }
  0x21   :  { %v187_v26 = vld [vmem:[#allocation5 + $0x320] sm:$0xff]  ;;  %v188_v27 = vld [vmem:[#allocation5 + $0x328] sm:$0xff]  ;;  %249 = vmatpush.msra.mxu1 %v191_v22  ;;  %289 = vmatpush.msra.mxu3 %v192_v23  ;;  %v138_v12 = vld [vmem:[#allocation5 + $0x198] sm:$0xff] }
  0x22   :  { %v119_v28 = vld [vmem:[#allocation5 + $0x100] sm:$0xff]  ;;  %v120_v29 = vld [vmem:[#allocation5 + $0x108] sm:$0xff]  ;;  %230 = vmatpush.msra.mxu0 %v123_v24  ;;  %270 = vmatpush.msra.mxu2 %v124_v25  ;;  %v206_v13 = vld [vmem:[#allocation5 + $0x3b8] sm:$0xff] }
  0x23   :  { %v183_v30 = vld [vmem:[#allocation5 + $0x300] sm:$0xff]  ;;  %v184_v31 = vld [vmem:[#allocation5 + $0x308] sm:$0xff]  ;;  %250 = vmatpush.msra.mxu1 %v187_v26  ;;  %290 = vmatpush.msra.mxu3 %v188_v27  ;;  %v133_v14 = vld [vmem:[#allocation5 + $0x170] sm:$0xff] }
  0x24   :  { %v115_v32 = vld [vmem:[#allocation5 + $0xe0] sm:$0xff]  ;;  %v116_v33 = vld [vmem:[#allocation5 + $0xe8] sm:$0xff]  ;;  %231 = vmatpush.msra.mxu0 %v119_v28  ;;  %271 = vmatpush.msra.mxu2 %v120_v29  ;;  %v201_v15 = vld [vmem:[#allocation5 + $0x390] sm:$0xff] }
  0x25   :  { %v179_v34 = vld [vmem:[#allocation5 + $0x2e0] sm:$0xff]  ;;  %v180_v35 = vld [vmem:[#allocation5 + $0x2e8] sm:$0xff]  ;;  %251 = vmatpush.msra.mxu1 %v183_v30  ;;  %291 = vmatpush.msra.mxu3 %v184_v31  ;;  %v134_v16 = vld [vmem:[#allocation5 + $0x178] sm:$0xff] }
  0x26   :  { %v111_v36 = vld [vmem:[#allocation5 + $0xc0] sm:$0xff]  ;;  %v112_v37 = vld [vmem:[#allocation5 + $0xc8] sm:$0xff]  ;;  %232 = vmatpush.msra.mxu0 %v115_v32  ;;  %272 = vmatpush.msra.mxu2 %v116_v33  ;;  %v202_v17 = vld [vmem:[#allocation5 + $0x398] sm:$0xff] }
  0x27   :  { %v175_v38 = vld [vmem:[#allocation5 + $0x2c0] sm:$0xff]  ;;  %v176_v39 = vld [vmem:[#allocation5 + $0x2c8] sm:$0xff]  ;;  %252 = vmatpush.msra.mxu1 %v179_v34  ;;  %292 = vmatpush.msra.mxu3 %v180_v35  ;;  %v129_v18 = vld [vmem:[#allocation5 + $0x150] sm:$0xff] }
  0x28   :  { %v107_v40 = vld [vmem:[#allocation5 + $0xa0] sm:$0xff]  ;;  %v108_v41 = vld [vmem:[#allocation5 + $0xa8] sm:$0xff]  ;;  %233 = vmatpush.msra.mxu0 %v111_v36  ;;  %273 = vmatpush.msra.mxu2 %v112_v37  ;;  %v197_v19 = vld [vmem:[#allocation5 + $0x370] sm:$0xff] }
  0x29   :  { %v171_v42 = vld [vmem:[#allocation5 + $0x2a0] sm:$0xff]  ;;  %v172_v43 = vld [vmem:[#allocation5 + $0x2a8] sm:$0xff]  ;;  %253 = vmatpush.msra.mxu1 %v175_v38  ;;  %293 = vmatpush.msra.mxu3 %v176_v39  ;;  %v130_v20 = vld [vmem:[#allocation5 + $0x158] sm:$0xff] }
  0x2a   :  { %v103_v44 = vld [vmem:[#allocation5 + $0x80] sm:$0xff]  ;;  %v104_v45 = vld [vmem:[#allocation5 + $0x88] sm:$0xff]  ;;  %234 = vmatpush.msra.mxu0 %v107_v40  ;;  %274 = vmatpush.msra.mxu2 %v108_v41  ;;  %v198_v21 = vld [vmem:[#allocation5 + $0x378] sm:$0xff] }
  0x2b   :  { %v167_v46 = vld [vmem:[#allocation5 + $0x280] sm:$0xff]  ;;  %v168_v47 = vld [vmem:[#allocation5 + $0x288] sm:$0xff]  ;;  %254 = vmatpush.msra.mxu1 %v171_v42  ;;  %294 = vmatpush.msra.mxu3 %v172_v43  ;;  %v125_v22 = vld [vmem:[#allocation5 + $0x130] sm:$0xff] }
  0x2c   :  { %v99_v48 = vld [vmem:[#allocation5 + $0x60] sm:$0xff]  ;;  %v100_v49 = vld [vmem:[#allocation5 + $0x68] sm:$0xff]  ;;  %235 = vmatpush.msra.mxu0 %v103_v44  ;;  %275 = vmatpush.msra.mxu2 %v104_v45  ;;  %v193_v23 = vld [vmem:[#allocation5 + $0x350] sm:$0xff] }
  0x2d   :  { %v163_v50 = vld [vmem:[#allocation5 + $0x260] sm:$0xff]  ;;  %v164_v51 = vld [vmem:[#allocation5 + $0x268] sm:$0xff]  ;;  %255 = vmatpush.msra.mxu1 %v167_v46  ;;  %295 = vmatpush.msra.mxu3 %v168_v47  ;;  %v126_v24 = vld [vmem:[#allocation5 + $0x138] sm:$0xff] }
  0x2e   :  { %v95_v52 = vld [vmem:[#allocation5 + $0x40] sm:$0xff]  ;;  %v96_v53 = vld [vmem:[#allocation5 + $0x48] sm:$0xff]  ;;  %236 = vmatpush.msra.mxu0 %v99_v48  ;;  %276 = vmatpush.msra.mxu2 %v100_v49  ;;  %v194_v25 = vld [vmem:[#allocation5 + $0x358] sm:$0xff] }
  0x2f   :  { %v159_v54 = vld [vmem:[#allocation5 + $0x240] sm:$0xff]  ;;  %v160_v55 = vld [vmem:[#allocation5 + $0x248] sm:$0xff]  ;;  %256 = vmatpush.msra.mxu1 %v163_v50  ;;  %296 = vmatpush.msra.mxu3 %v164_v51  ;;  %v121_v26 = vld [vmem:[#allocation5 + $0x110] sm:$0xff] }
  0x30   :  { %v91_v56 = vld [vmem:[#allocation5 + $0x20] sm:$0xff]  ;;  %v92_v57 = vld [vmem:[#allocation5 + $0x28] sm:$0xff]  ;;  %237 = vmatpush.msra.mxu0 %v95_v52  ;;  %277 = vmatpush.msra.mxu2 %v96_v53  ;;  %v189_v27 = vld [vmem:[#allocation5 + $0x330] sm:$0xff] }
  0x31   :  { %v155_v58 = vld [vmem:[#allocation5 + $0x220] sm:$0xff]  ;;  %v156_v59 = vld [vmem:[#allocation5 + $0x228] sm:$0xff]  ;;  %257 = vmatpush.msra.mxu1 %v159_v54  ;;  %297 = vmatpush.msra.mxu3 %v160_v55  ;;  %v122_v28 = vld [vmem:[#allocation5 + $0x118] sm:$0xff] }
  0x32   :  { %v87_v60 = vld [vmem:[#allocation5] sm:$0xff]  ;;  %v88_v61 = vld [vmem:[#allocation5 + $0x8] sm:$0xff]  ;;  %238 = vmatpush.msra.mxu0 %v91_v56  ;;  %278 = vmatpush.msra.mxu2 %v92_v57  ;;  %v190_v29 = vld [vmem:[#allocation5 + $0x338] sm:$0xff] }
  0x33   :  { %258 = vmatpush.msra.mxu1 %v155_v58  ;;  %298 = vmatpush.msra.mxu3 %v156_v59  ;;  %v151_v0 = vld [vmem:[#allocation5 + $0x200] sm:$0xff]  ;;  %v152_v1 = vld [vmem:[#allocation5 + $0x208] sm:$0xff]  ;;  %v117_v30 = vld [vmem:[#allocation5 + $0xf0] sm:$0xff] }
  0x34   :  { %239 = vmatpush.msra.mxu0 %v87_v60  ;;  %279 = vmatpush.msra.mxu2 %v88_v61  ;;  %v185_v31 = vld [vmem:[#allocation5 + $0x310] sm:$0xff]  ;;  %v118_v32 = vld [vmem:[#allocation5 + $0xf8] sm:$0xff] }
  0x35   :  { %259 = vmatpush.msra.mxu1 %v151_v0  ;;  %299 = vmatpush.msra.mxu3 %v152_v1  ;;  %v186_v33 = vld [vmem:[#allocation5 + $0x318] sm:$0xff]  ;;  %v113_v34 = vld [vmem:[#allocation5 + $0xd0] sm:$0xff] }
  0x36   :  { %304 = vmatpush.msrb.mxu0 %v149_v62  ;;  %344 = vmatpush.msrb.mxu2 %v150_v63  ;;  %v181_v35 = vld [vmem:[#allocation5 + $0x2f0] sm:$0xff]  ;;  %v114_v36 = vld [vmem:[#allocation5 + $0xd8] sm:$0xff] }
  0x37   :  { %324 = vmatpush.msrb.mxu1 %v213_v3  ;;  %364 = vmatpush.msrb.mxu3 %v214_v5  ;;  %v182_v37 = vld [vmem:[#allocation5 + $0x2f8] sm:$0xff]  ;;  %v109_v38 = vld [vmem:[#allocation5 + $0xb0] sm:$0xff] }
  0x38   :  { %305 = vmatpush.msrb.mxu0 %v145_v2  ;;  %345 = vmatpush.msrb.mxu2 %v146_v4  ;;  %v177_v39 = vld [vmem:[#allocation5 + $0x2d0] sm:$0xff]  ;;  %v110_v40 = vld [vmem:[#allocation5 + $0xb8] sm:$0xff] }
  0x39   :  { %325 = vmatpush.msrb.mxu1 %v209_v7  ;;  %365 = vmatpush.msrb.mxu3 %v210_v9  ;;  %v178_v41 = vld [vmem:[#allocation5 + $0x2d8] sm:$0xff]  ;;  %v105_v42 = vld [vmem:[#allocation5 + $0x90] sm:$0xff] }
  0x3a   :  { %306 = vmatpush.msrb.mxu0 %v141_v6  ;;  %346 = vmatpush.msrb.mxu2 %v142_v8  ;;  %v173_v43 = vld [vmem:[#allocation5 + $0x2b0] sm:$0xff]  ;;  %v106_v44 = vld [vmem:[#allocation5 + $0x98] sm:$0xff] }
  0x3b   :  { %326 = vmatpush.msrb.mxu1 %v205_v11  ;;  %366 = vmatpush.msrb.mxu3 %v206_v13  ;;  %v174_v45 = vld [vmem:[#allocation5 + $0x2b8] sm:$0xff]  ;;  %v85_v46 = vld [vmem:[#allocation2] sm:$0xff] }
  0x3c   :  { %307 = vmatpush.msrb.mxu0 %v137_v10  ;;  %347 = vmatpush.msrb.mxu2 %v138_v12  ;;  %v101_v47 = vld [vmem:[#allocation5 + $0x70] sm:$0xff]  ;;  %v102_v49 = vld [vmem:[#allocation5 + $0x78] sm:$0xff] }
  0x3d   :  { %327 = vmatpush.msrb.mxu1 %v201_v15  ;;  %367 = vmatpush.msrb.mxu3 %v202_v17  ;;  %v169_v48 = vld [vmem:[#allocation5 + $0x290] sm:$0xff]  ;;  %v170_v50 = vld [vmem:[#allocation5 + $0x298] sm:$0xff]  ;;  %v416_v15 = vld [vmem:[#allocation8 + $0xe0] sm:$0xff] }
  0x3e   :  { %308 = vmatpush.msrb.mxu0 %v133_v14  ;;  %348 = vmatpush.msrb.mxu2 %v134_v16  ;;  %v86_v51 = vld [vmem:[#allocation2 + $0x8] sm:$0xff]  ;;  %v97_v52 = vld [vmem:[#allocation5 + $0x50] sm:$0xff]  ;;  %v400_v14 = vld [vmem:[#allocation8 + $0x60] sm:$0xff] }
  0x3f   :  { %328 = vmatpush.msrb.mxu1 %v197_v19  ;;  %368 = vmatpush.msrb.mxu3 %v198_v21  ;;  %v165_v53 = vld [vmem:[#allocation5 + $0x270] sm:$0xff]  ;;  %v98_v54 = vld [vmem:[#allocation5 + $0x58] sm:$0xff]  ;;  %v432_v16 = vld [vmem:[#allocation8 + $0x160] sm:$0xff] }
  0x40   :  { %309 = vmatpush.msrb.mxu0 %v129_v18  ;;  %349 = vmatpush.msrb.mxu2 %v130_v20  ;;  %v166_v55 = vld [vmem:[#allocation5 + $0x278] sm:$0xff]  ;;  %v93_v56 = vld [vmem:[#allocation5 + $0x30] sm:$0xff]  ;;  %v448_v17 = vld [vmem:[#allocation8 + $0x1e0] sm:$0xff] }
  0x41   :  { %329 = vmatpush.msrb.mxu1 %v193_v23  ;;  %369 = vmatpush.msrb.mxu3 %v194_v25  ;;  %v161_v57 = vld [vmem:[#allocation5 + $0x250] sm:$0xff]  ;;  %v94_v58 = vld [vmem:[#allocation5 + $0x38] sm:$0xff] }
  0x42   :  { %310 = vmatpush.msrb.mxu0 %v125_v22  ;;  %350 = vmatpush.msrb.mxu2 %v126_v24  ;;  %v162_v59 = vld [vmem:[#allocation5 + $0x258] sm:$0xff]  ;;  %v89_v60 = vld [vmem:[#allocation5 + $0x10] sm:$0xff] }
  0x43   :  { %330 = vmatpush.msrb.mxu1 %v189_v27  ;;  %370 = vmatpush.msrb.mxu3 %v190_v29  ;;  %v157_v61 = vld [vmem:[#allocation5 + $0x230] sm:$0xff]  ;;  %v90_v62 = vld [vmem:[#allocation5 + $0x18] sm:$0xff]  ;;  %v412_v29 = vld [vmem:[#allocation8 + $0xc0] sm:$0xff] }
  0x44   :  { %311 = vmatpush.msrb.mxu0 %v121_v26  ;;  %351 = vmatpush.msrb.mxu2 %v122_v28  ;;  %v158_v63 = vld [vmem:[#allocation5 + $0x238] sm:$0xff]  ;;  %v153_v0 = vld [vmem:[#allocation5 + $0x210] sm:$0xff]  ;;  %v396_v28 = vld [vmem:[#allocation8 + $0x40] sm:$0xff] }
  0x45   :  { %331 = vmatpush.msrb.mxu1 %v185_v31  ;;  %371 = vmatpush.msrb.mxu3 %v186_v33  ;;  %v154_v1 = vld [vmem:[#allocation5 + $0x218] sm:$0xff]  ;;  %v401_v10 = vld [vmem:[#allocation8 + $0x68] sm:$0xff] }
  0x46   :  { %312 = vmatpush.msrb.mxu0 %v117_v30  ;;  %352 = vmatpush.msrb.mxu2 %v118_v32  ;;  %v403_v2 = vld [vmem:[#allocation8 + $0x78] sm:$0xff]  ;;  %v402_v6 = vld [vmem:[#allocation8 + $0x70] sm:$0xff]  ;;  %v417_v11 = vld [vmem:[#allocation8 + $0xe8] sm:$0xff] }
  0x47   :  { %332 = vmatpush.msrb.mxu1 %v181_v35  ;;  %372 = vmatpush.msrb.mxu3 %v182_v37  ;;  %v419_v3 = vld [vmem:[#allocation8 + $0xf8] sm:$0xff]  ;;  %v418_v7 = vld [vmem:[#allocation8 + $0xf0] sm:$0xff]  ;;  %v433_v12 = vld [vmem:[#allocation8 + $0x168] sm:$0xff] }
  0x48   :  { %313 = vmatpush.msrb.mxu0 %v113_v34  ;;  %353 = vmatpush.msrb.mxu2 %v114_v36  ;;  %v435_v4 = vld [vmem:[#allocation8 + $0x178] sm:$0xff]  ;;  %v434_v8 = vld [vmem:[#allocation8 + $0x170] sm:$0xff]  ;;  %v449_v13 = vld [vmem:[#allocation8 + $0x1e8] sm:$0xff] }
  0x49   :  { %333 = vmatpush.msrb.mxu1 %v177_v39  ;;  %373 = vmatpush.msrb.mxu3 %v178_v41  ;;  %v451_v5 = vld [vmem:[#allocation8 + $0x1f8] sm:$0xff]  ;;  %v450_v9 = vld [vmem:[#allocation8 + $0x1f0] sm:$0xff]  ;;  %v397_v25 = vld [vmem:[#allocation8 + $0x48] sm:$0xff] }
  0x4a   :  { %314 = vmatpush.msrb.mxu0 %v109_v38  ;;  %354 = vmatpush.msrb.mxu2 %v110_v40  ;;  %v399_v18 = vld [vmem:[#allocation8 + $0x58] sm:$0xff]  ;;  %v398_v22 = vld [vmem:[#allocation8 + $0x50] sm:$0xff]  ;;  %v413_v26 = vld [vmem:[#allocation8 + $0xc8] sm:$0xff] }
  0x4b   :  { %334 = vmatpush.msrb.mxu1 %v173_v43  ;;  %374 = vmatpush.msrb.mxu3 %v174_v45  ;;  %v415_v19 = vld [vmem:[#allocation8 + $0xd8] sm:$0xff]  ;;  %v414_v23 = vld [vmem:[#allocation8 + $0xd0] sm:$0xff]  ;;  %v429_v27 = vld [vmem:[#allocation8 + $0x148] sm:$0xff] }
  0x4c   :  { %315 = vmatpush.msrb.mxu0 %v105_v42  ;;  %355 = vmatpush.msrb.mxu2 %v106_v44  ;;  %v431_v20 = vld [vmem:[#allocation8 + $0x158] sm:$0xff]  ;;  %v430_v24 = vld [vmem:[#allocation8 + $0x150] sm:$0xff]  ;;  %v428_v30 = vld [vmem:[#allocation8 + $0x140] sm:$0xff] }
  0x4d   :  { %240 = vmatmul.f32.vlgmr.msra.gmra.mxu0 %v85_v46  ;;  %280 = vmatmul.f32.vlgmr.msra.gmra.mxu2 %v85_v46  ;;  %v447_v21 = vld [vmem:[#allocation8 + $0x1d8] sm:$0xff]  ;;  %v394_v33 = vld [vmem:[#allocation8 + $0x30] sm:$0xff]  ;;  %v393_v34 = vld [vmem:[#allocation8 + $0x28] sm:$0xff] }
  0x4e   :  { %316 = vmatpush.msrb.mxu0 %v101_v47  ;;  %335 = vmatpush.msrb.mxu1 %v169_v48  ;;  %v395_v31 = vld [vmem:[#allocation8 + $0x38] sm:$0xff]  ;;  %v410_v35 = vld [vmem:[#allocation8 + $0xb0] sm:$0xff]  ;;  %v392_v38 = vld [vmem:[#allocation8 + $0x20] sm:$0xff] }
  0x4f   :  { %356 = vmatpush.msrb.mxu2 %v102_v49  ;;  %375 = vmatpush.msrb.mxu3 %v170_v50  ;;  %v411_v32 = vld [vmem:[#allocation8 + $0xb8] sm:$0xff]  ;;  %v446_v37 = vld [vmem:[#allocation8 + $0x1d0] sm:$0xff]  ;;  %v409_v39 = vld [vmem:[#allocation8 + $0xa8] sm:$0xff] }
  0x50   :  { %260 = vmatmul.f32.vlgmr.msra.gmra.mxu1 %v86_v51  ;;  %300 = vmatmul.f32.vlgmr.msra.gmra.mxu3 %v86_v51  ;;  %v427_v36 = vld [vmem:[#allocation8 + $0x138] sm:$0xff]  ;;  %v426_v40 = vld [vmem:[#allocation8 + $0x130] sm:$0xff]  ;;  %v445_v41 = vld [vmem:[#allocation8 + $0x1c8] sm:$0xff] }
  0x51   :  { %317 = vmatpush.msrb.mxu0 %v97_v52  ;;  %336 = vmatpush.msrb.mxu1 %v165_v53  ;;  %v391_v42 = vld [vmem:[#allocation8 + $0x18] sm:$0xff]  ;;  %v408_v43 = vld [vmem:[#allocation8 + $0xa0] sm:$0xff]  ;;  %v425_v44 = vld [vmem:[#allocation8 + $0x128] sm:$0xff] }
  0x52   :  { %357 = vmatpush.msrb.mxu2 %v98_v54  ;;  %376 = vmatpush.msrb.mxu3 %v166_v55  ;;  %v444_v45 = vld [vmem:[#allocation8 + $0x1c0] sm:$0xff]  ;;  %v407_v47 = vld [vmem:[#allocation8 + $0x98] sm:$0xff]  ;;  %v389_v50 = vld [vmem:[#allocation8 + $0x8] sm:$0xff] }
  0x53   :  { %318 = vmatpush.msrb.mxu0 %v93_v56  ;;  %337 = vmatpush.msrb.mxu1 %v161_v57  ;;  %v424_v48 = vld [vmem:[#allocation8 + $0x120] sm:$0xff]  ;;  %v443_v49 = vld [vmem:[#allocation8 + $0x1b8] sm:$0xff]  ;;  %v442_v53 = vld [vmem:[#allocation8 + $0x1b0] sm:$0xff] }
  0x54   :  { %358 = vmatpush.msrb.mxu2 %v94_v58  ;;  %377 = vmatpush.msrb.mxu3 %v162_v59  ;;  %v423_v52 = vld [vmem:[#allocation8 + $0x118] sm:$0xff]  ;;  %v388_v54 = vld [vmem:[#allocation8] sm:$0xff]  ;;  %v405_v55 = vld [vmem:[#allocation8 + $0x88] sm:$0xff] }
  0x55   :  { %319 = vmatpush.msrb.mxu0 %v89_v60  ;;  %338 = vmatpush.msrb.mxu1 %v157_v61  ;;  %v422_v56 = vld [vmem:[#allocation8 + $0x110] sm:$0xff]  ;;  %v441_v57 = vld [vmem:[#allocation8 + $0x1a8] sm:$0xff]  ;;  %v404_v58 = vld [vmem:[#allocation8 + $0x80] sm:$0xff] }
  0x56   :  { %359 = vmatpush.msrb.mxu2 %v90_v62  ;;  %378 = vmatpush.msrb.mxu3 %v158_v63  ;;  %v421_v59 = vld [vmem:[#allocation8 + $0x108] sm:$0xff]  ;;  %v440_v60 = vld [vmem:[#allocation8 + $0x1a0] sm:$0xff]  ;;  %v439_v62 = vld [vmem:[#allocation8 + $0x198] sm:$0xff] }
  0x57   :  { %320 = vmatmul.f32.vlgmr.msrb.gmra.mxu0 %v85_v46  ;;  %360 = vmatmul.f32.vlgmr.msrb.gmra.mxu2 %v85_v46  ;;  %v390_v46 = vld [vmem:[#allocation8 + $0x10] sm:$0xff]  ;;  %v420_v61 = vld [vmem:[#allocation8 + $0x100] sm:$0xff] }
  0x58   :  { %339 = vmatpush.msrb.mxu1 %v153_v0  ;;  %379 = vmatpush.msrb.mxu3 %v154_v1  ;;  %v438_v63 = vld [vmem:[#allocation8 + $0x190] sm:$0xff]  ;;  %v437_v0 = vld [vmem:[#allocation8 + $0x188] sm:$0xff]  ;;  %v436_v1 = vld [vmem:[#allocation8 + $0x180] sm:$0xff] }
  0x59   :  { %340 = vmatmul.f32.vlgmr.msrb.gmra.mxu1 %v86_v51  ;;  %380 = vmatmul.f32.vlgmr.msrb.gmra.mxu3 %v86_v51  ;;  %v406_v51 = vld [vmem:[#allocation8 + $0x90] sm:$0xff] }
  0x5a   :  { %455 = vmatpush.msra.mxu0 %v403_v2  ;;  %475 = vmatpush.msra.mxu1 %v419_v3  ;;  %v80_v2 = vld [vmem:[#allocation7] sm:$0xf] }
  0x5b   :  { %495 = vmatpush.msra.mxu2 %v435_v4  ;;  %515 = vmatpush.msra.mxu3 %v451_v5  ;;  %v216_v3 = vperm.slane %v80_v2, 0 }
  0x5c   :  { %456 = vmatpush.msra.mxu0 %v402_v6  ;;  %476 = vmatpush.msra.mxu1 %v418_v7  ;;  %v217_v7 = vperm.slane %v80_v2, 1 }
  0x5d   :  { %496 = vmatpush.msra.mxu2 %v434_v8  ;;  %516 = vmatpush.msra.mxu3 %v450_v9 }
  0x5e   :  { %457 = vmatpush.msra.mxu0 %v401_v10  ;;  %477 = vmatpush.msra.mxu1 %v417_v11 }
  0x5f   :  { %497 = vmatpush.msra.mxu2 %v433_v12  ;;  %517 = vmatpush.msra.mxu3 %v449_v13  ;;  %v218_v12 = vperm.slane %v80_v2, 2 }
  0x60   :  { %458 = vmatpush.msra.mxu0 %v400_v14  ;;  %478 = vmatpush.msra.mxu1 %v416_v15 }
  0x61   :  { %498 = vmatpush.msra.mxu2 %v432_v16  ;;  %518 = vmatpush.msra.mxu3 %v448_v17 }
  0x62   :  { %459 = vmatpush.msra.mxu0 %v399_v18  ;;  %479 = vmatpush.msra.mxu1 %v415_v19 }
  0x63   :  { %499 = vmatpush.msra.mxu2 %v431_v20  ;;  %519 = vmatpush.msra.mxu3 %v447_v21  ;;  %v219_v20 = vperm.slane %v80_v2, 3 }
  0x64   :  { %460 = vmatpush.msra.mxu0 %v398_v22  ;;  %480 = vmatpush.msra.mxu1 %v414_v23 }
  0x65   :  { %500 = vmatpush.msra.mxu2 %v430_v24  ;;  %520 = vmatpush.msra.mxu3 %v446_v37 }
  0x66   :  { %461 = vmatpush.msra.mxu0 %v397_v25  ;;  %481 = vmatpush.msra.mxu1 %v413_v26 }
  0x67   :  { %501 = vmatpush.msra.mxu2 %v429_v27  ;;  %521 = vmatpush.msra.mxu3 %v445_v41  ;;  %v564_v27 = vld [vmem:[%s754_s4] ss:$0 sm:$0xff] }
  0x68   :  { %462 = vmatpush.msra.mxu0 %v396_v28  ;;  %482 = vmatpush.msra.mxu1 %v412_v29 }
  0x69   :  { %502 = vmatpush.msra.mxu2 %v428_v30  ;;  %522 = vmatpush.msra.mxu3 %v444_v45 }
  0x6a   :  { %463 = vmatpush.msra.mxu0 %v395_v31  ;;  %483 = vmatpush.msra.mxu1 %v411_v32 }
  0x6b   :  { %503 = vmatpush.msra.mxu2 %v427_v36  ;;  %523 = vmatpush.msra.mxu3 %v443_v49 }
  0x6c   :  { %464 = vmatpush.msra.mxu0 %v394_v33  ;;  %484 = vmatpush.msra.mxu1 %v410_v35 }
  0x6d   :  { %504 = vmatpush.msra.mxu2 %v426_v40  ;;  %524 = vmatpush.msra.mxu3 %v442_v53 }
  0x6e   :  { %465 = vmatpush.msra.mxu0 %v393_v34  ;;  %485 = vmatpush.msra.mxu1 %v409_v39 }
  0x6f   :  { %505 = vmatpush.msra.mxu2 %v425_v44  ;;  %525 = vmatpush.msra.mxu3 %v441_v57 }
  0x70   :  { %466 = vmatpush.msra.mxu0 %v392_v38  ;;  %486 = vmatpush.msra.mxu1 %v408_v43 }
  0x71   :  { %506 = vmatpush.msra.mxu2 %v424_v48  ;;  %526 = vmatpush.msra.mxu3 %v440_v60 }
  0x72   :  { %467 = vmatpush.msra.mxu0 %v391_v42  ;;  %487 = vmatpush.msra.mxu1 %v407_v47 }
  0x73   :  { %507 = vmatpush.msra.mxu2 %v423_v52  ;;  %527 = vmatpush.msra.mxu3 %v439_v62 }
  0x74   :  { %468 = vmatpush.msra.mxu0 %v390_v46  ;;  %488 = vmatpush.msra.mxu1 %v406_v51 }
  0x75   :  { %508 = vmatpush.msra.mxu2 %v422_v56  ;;  %528 = vmatpush.msra.mxu3 %v438_v63 }
  0x76   :  { %469 = vmatpush.msra.mxu0 %v389_v50  ;;  %489 = vmatpush.msra.mxu1 %v405_v55 }
  0x77   :  { %509 = vmatpush.msra.mxu2 %v421_v59  ;;  %529 = vmatpush.msra.mxu3 %v437_v0 }
  0x78   :  { %470 = vmatpush.msra.mxu0 %v388_v54  ;;  %490 = vmatpush.msra.mxu1 %v404_v58 }
  0x79   :  { %510 = vmatpush.msra.mxu2 %v420_v61  ;;  %530 = vmatpush.msra.mxu3 %v436_v1 }
  0xca   :  { %v241_v4 = vpop.f32.mrf.mxu0 }
  0xcb   :  { %v242_v5 = vadd.f32 %v241_v4, %v216_v3 }
  0xcd   :  { %v261_v6 = vpop.f32.mrf.mxu1 }
  0xce   :  { %v262_v8 = vadd.f32 %v261_v6, %v242_v5 }
  0xd0   :  { %v384_v9 = vmax.f32 %v262_v8, 0.0  ;;  %v281_v10 = vpop.f32.mrf.mxu2 }
  0xd1   :  { %v282_v11 = vadd.f32 %v281_v10, %v217_v7 }
  0xd2   :  { %471 = vmatmul.f32.vlgmr.msra.gmra.mxu0 %v384_v9 }
  0xd3   :  { %v301_v13 = vpop.f32.mrf.mxu3 }
  0xd4   :  { %v302_v14 = vadd.f32 %v301_v13, %v282_v11  ;;  %v321_v15 = vpop.f32.mrf.mxu0 }
  0xd5   :  { %v322_v16 = vadd.f32 %v321_v15, %v218_v12 }
  0xd6   :  { %v385_v17 = vmax.f32 %v302_v14, 0.0  ;;  %v341_v18 = vpop.f32.mrf.mxu1 }
  0xd7   :  { %v342_v19 = vadd.f32 %v341_v18, %v322_v16 }
  0xd8   :  { %491 = vmatmul.f32.vlgmr.msra.gmra.mxu1 %v385_v17 }
  0xd9   :  { %v386_v21 = vmax.f32 %v342_v19, 0.0 }
  0xda   :  { %v361_v22 = vpop.f32.mrf.mxu2 }
  0xdb   :  { %v362_v23 = vadd.f32 %v361_v22, %v219_v20  ;;  %511 = vmatmul.f32.vlgmr.msra.gmra.mxu2 %v386_v21 }
  0xdc   :  { %v381_v24 = vpop.f32.mrf.mxu3 }
  0xdd   :  { %v382_v25 = vadd.f32 %v381_v24, %v362_v23 }
  0xdf   :  { %v387_v26 = vmax.f32 %v382_v25, 0.0 }
  0xe1   :  { %531 = vmatmul.f32.vlgmr.msra.gmra.mxu3 %v387_v26 }
 0x14f   :  { %v472_v28 = vpop.f32.mrf.mxu0 }
 0x150   :  { %v473_v29 = vadd.f32 %v564_v27, %v472_v28 }
 0x155   :  { %v492_v30 = vpop.f32.mrf.mxu1 }
 0x156   :  { %v493_v32 = vadd.f32 %v492_v30, %v473_v29 }
 0x15e   :  { %v512_v31 = vpop.f32.mrf.mxu2 }
 0x15f   :  { %v513_v33 = vadd.f32 %v512_v31, %v493_v32 }
 0x164   :  { %v532_v34 = vpop.f32.mrf.mxu3 }
 0x165   :  { %v533_v35 = vadd.f32 %v532_v34, %v513_v33 }
 0x167   :  { %535 = vst [vmem:[#allocation10] sm:$0xff] %v533_v35 }
 0x168   :  { %546 = dma.vmem_to_hbm [thread:$0]  %s542_s16, 128, %s544_s19, [#allocation4]  }
 0x169   :  { %691 = dma.done.wait [#allocation4], 128  }
 0x16a   :  { %692 = vsyncadd [#allocation4], 4294967168 }
 0x16b   :  { %551 = vsyncpa [#allocation3], 1 }
 0x16c   :  { %552 = vsyncpa [#allocation6], 1 }
 0x16d   :  { %553 = vsyncpa [#allocation9], 1 }
 0x16e   :  { %554 = vsyncpa [#allocation4], 1 }

</bundles_post_ra>
